<compile_context>
chip_gen: v5e
topology: v5e:2x2
jax: 0.10.0
libtpu: 0.0.40
codegen_flags: <defaults>
</compile_context>

<pallas_src>
import math
from functools import partial

import jax
import jax.numpy as jnp
from jax.experimental import pallas as pl
from jax.experimental.pallas import tpu as pltpu


def _residual_block_kernel(x_ref, bw1_ref, t1_ref, bw2_ref, t2_ref, o_ref,
                           *, C, H, W):
    """One grid step over a block of nb images.

    x_ref  : (nb, H, W*C)      f32  NHWC images with (W, C) merged on the lane axis
    bw1_ref: (3, W*C,  W1*C)   f32  conv1 banded row weights (kh-indexed, BN folded)
    t1_ref : (1, W1*C)         f32  conv1 folded per-channel shift, tiled over W1
    bw2_ref: (3, W1*C, W2*C)   f32  conv2 banded row weights
    t2_ref : (1, W2*C)         f32
    o_ref  : (1, nb*H2, W2*C)  f32  lane-dense output slab (row = image*H2 + h)
    """
    H1, W1 = H - 2, W - 2
    H2, W2 = H - 4, W - 4
    nb = x_ref.shape[0]

    x = x_ref[...]                                        # (nb, H, W*C) f32

    def conv_rows(src, bw_ref, Ho):
        """VALID 3x3 conv with kw/cin/cout folded into banded weights.

        src: (nb, Hs, Ws*C); bw_ref: (3, Ws*C, Wo*C). Returns (nb*Ho, Wo*C) f32.
        Three accumulating MXU dots (one per kh); accumulation stays in f32.
        """
        ws_c = src.shape[2]
        acc = None
        for kh in range(3):
            lhs = src[:, kh:kh + Ho, :].reshape(nb * Ho, ws_c)
            part = jnp.dot(lhs, bw_ref[kh], preferred_element_type=jnp.float32)
            acc = part if acc is None else acc + part
        return acc

    # conv1 (+ folded bias/bn1) + relu; stays lane-dense: (nb, H1, W1*C).
    h1 = jnp.maximum(conv_rows(x, bw1_ref, H1) + t1_ref[...], 0.0)
    h1 = h1.reshape(nb, H1, W1 * C)

    # conv2 (+ folded bias/bn2); Dropout2d(0.5) is the identity in eval mode.
    h2 = conv_rows(h1, bw2_ref, H2) + t2_ref[...]         # (nb*H2, W2*C)

    # residual add (receptive-field-aligned center crop of x) + final relu.
    ident = x[:, 2:2 + H2, 2 * C:2 * C + W2 * C].reshape(nb * H2, W2 * C)
    o_ref[...] = jnp.maximum(h2 + ident, 0.0)[None]


def fold_params(p, eps=1e-5):
    """Fold conv bias + eval-mode BN into (scaled OIHW weights, per-channel shift)."""
    def fold(w, b, gamma, beta, mean, var):
        scale = gamma / jnp.sqrt(var + eps)
        return w * scale[:, None, None, None], b * scale + beta - mean * scale

    w1, t1 = fold(p['w1'], p['b1'], p['gamma1'], p['beta1'], p['mean1'], p['var1'])
    w2, t2 = fold(p['w2'], p['b2'], p['gamma2'], p['beta2'], p['mean2'], p['var2'])
    return w1, t1, w2, t2


def banded_conv_weight(w_oihw, w_in):
    """(Cout, Cin, 3, 3) OIHW -> (3, W_in*Cin, W_out*Cout) banded row weights.

    Band_kh[w_i*Cin + ci, w_o*Cout + co] = w[co, ci, kh, w_i - w_o] when
    0 <= w_i - w_o < 3, else 0, so a VALID 3x3 conv over one output row is
        out_row = sum_kh  in_row[kh] @ Band_kh .
    Built once in the wrapper (one-time, tiny).
    """
    Cout, Cin, KH, KW = w_oihw.shape
    w_out = w_in - KW + 1
    j = jnp.arange(KH * w_in * Cin)
    kh = j // (w_in * Cin)
    wi = (j // Cin) % w_in
    ci = j % Cin
    m = jnp.arange(w_out * Cout)
    wo = m // Cout
    co = m % Cout
    kw = wi[:, None] - wo[None, :]                         # (J, M)
    valid = (kw >= 0) & (kw < KW)
    vals = w_oihw[co[None, :], ci[:, None], kh[:, None], jnp.clip(kw, 0, KW - 1)]
    big = jnp.where(valid, vals, 0.0).astype(jnp.float32)
    return big.reshape(KH, w_in * Cin, w_out * Cout)


def residual_blocks_forward(x_nchw, p, eps=1e-5, images_per_step=None):
    """Pallas-backed eval-mode forward. (N, C, H, W) f32 -> (N, C, H-4, W-4) f32."""
    N, C, H, W = x_nchw.shape
    H1, W1 = H - 2, W - 2
    H2, W2 = H - 4, W - 4

    # NCHW -> (N, H, W*C): channels sit next to W on the 128-lane axis so every
    # in-kernel operand / store is 48-192 lanes wide.  Boundary glue only —
    # chained residual blocks should stay in this layout.
    x = jnp.transpose(x_nchw, (0, 2, 3, 1)).astype(jnp.float32).reshape(N, H, W * C)

    w1f, t1, w2f, t2 = fold_params(p, eps)
    bw1 = banded_conv_weight(w1f, W)                       # (3, W*C,  W1*C)
    bw2 = banded_conv_weight(w2f, W1)                      # (3, W1*C, W2*C)
    t1m = jnp.tile(t1, W1).reshape(1, W1 * C).astype(jnp.float32)
    t2m = jnp.tile(t2, W2).reshape(1, W2 * C).astype(jnp.float32)

    # Few, large grid steps: single-TC chips (v5e/v6e) pay ~0.35us per step, so
    # fold as many images as fit a ~4 MiB input block into one step (v7x's
    # 64 MiB VMEM is safe with double buffering); large N then still yields
    # >= 2 steps, which megacore (v7x) can split via "parallel".
    if images_per_step is None:
        per_image = H * W * C * 4
        nb = max(1, min(N, (4 * 1024 * 1024) // per_image))
        while N % nb:
            nb -= 1
    else:
        nb = images_per_step
        assert N % nb == 0
    steps = N // nb

    kernel = partial(_residual_block_kernel, C=C, H=H, W=W)

    out = pl.pallas_call(
        kernel,
        out_shape=jax.ShapeDtypeStruct((steps, nb * H2, W2 * C), jnp.float32),
        grid_spec=pl.GridSpec(
            grid=(steps,),
            in_specs=[
                pl.BlockSpec((nb, H, W * C), lambda n: (n, 0, 0)),       # x
                pl.BlockSpec((3, W * C, W1 * C), lambda n: (0, 0, 0)),   # bw1
                pl.BlockSpec((1, W1 * C), lambda n: (0, 0)),             # shift1
                pl.BlockSpec((3, W1 * C, W2 * C), lambda n: (0, 0, 0)),  # bw2
                pl.BlockSpec((1, W2 * C), lambda n: (0, 0)),             # shift2
            ],
            out_specs=pl.BlockSpec((1, nb * H2, W2 * C), lambda n: (n, 0, 0)),
        ),
        compiler_params=pltpu.CompilerParams(
            dimension_semantics=("parallel",),
            vmem_limit_bytes=32 * 1024 * 1024,   # worst-case step footprint ~15 MiB
        ),
    )(x, bw1, t1m, bw2, t2m)

    # (steps, nb*H2, W2*C) -> (N, H2, W2, C) -> NCHW.  Reshape is free in HBM.
    out = out.reshape(N, H2, W2, C)
    return jnp.transpose(out, (0, 3, 1, 2))


def reference_forward(x, p, eps=1e-5, conv_dtype=jnp.float32, precision=None):
    """Pure-JAX reference (eval-mode semantics, BN folded)."""
    w1, t1, w2, t2 = fold_params(p, eps)
    dn = ('NCHW', 'OIHW', 'NCHW')

    def conv(a, w):
        return jax.lax.conv_general_dilated(
            a.astype(conv_dtype), w.astype(conv_dtype), (1, 1), 'VALID',
            dimension_numbers=dn, precision=precision,
            preferred_element_type=jnp.float32)

    out = jnp.maximum(conv(x, w1) + t1[None, :, None, None], 0.0)
    out = conv(out, w2) + t2[None, :, None, None]
    out = out + x[:, :, 2:-2, 2:-2]
    return jnp.maximum(out, 0.0)


def init_params(key, C):
    ks = jax.random.split(key, 12)
    std = 1.0 / math.sqrt(C * 9)
    return {
        'w1': jax.random.normal(ks[0], (C, C, 3, 3), jnp.float32) * std,
        'b1': jax.random.normal(ks[1], (C,), jnp.float32) * 0.1,
        'gamma1': jax.random.uniform(ks[2], (C,), jnp.float32, 0.5, 1.5),
        'beta1': jax.random.normal(ks[3], (C,), jnp.float32) * 0.1,
        'mean1': jax.random.normal(ks[4], (C,), jnp.float32) * 0.1,
        'var1': jax.random.uniform(ks[5], (C,), jnp.float32, 0.5, 1.5),
        'w2': jax.random.normal(ks[6], (C, C, 3, 3), jnp.float32) * std,
        'b2': jax.random.normal(ks[7], (C,), jnp.float32) * 0.1,
        'gamma2': jax.random.uniform(ks[8], (C,), jnp.float32, 0.5, 1.5),
        'beta2': jax.random.normal(ks[9], (C,), jnp.float32) * 0.1,
        'mean2': jax.random.normal(ks[10], (C,), jnp.float32) * 0.1,
        'var2': jax.random.uniform(ks[11], (C,), jnp.float32, 0.5, 1.5),
    }


if __name__ == "__main__":
    key = jax.random.PRNGKey(0)
    kx, kp = jax.random.split(key)

    N, C, H, W = 2, 4, 16, 16            # in_channel == out_channel == 4
    x = jax.random.normal(kx, (N, C, H, W), jnp.float32)
    params = init_params(kp, C)

    out = jax.block_until_ready(residual_blocks_forward(x, params))
    assert out.shape == (N, C, H - 4, W - 4), out.shape
    assert bool(jnp.all(out >= 0.0))      # final ReLU

    # The kernel's dots use f32 operands; depending on the Mosaic lowering the
    # MXU evaluates them at full f32 (multi-pass) or bf16-operand precision, so
    # require a close match to whichever reference flavor corresponds.
    ref_hi = reference_forward(x, params, precision=jax.lax.Precision.HIGHEST)
    ref_bf = reference_forward(x, params, conv_dtype=jnp.bfloat16)
    err = min(float(jnp.max(jnp.abs(out - ref_hi))),
              float(jnp.max(jnp.abs(out - ref_bf))))
    assert err < 3e-2, f"max abs error vs references: {err}"

    print("KERNEL_OK")
</pallas_src>

<mosaic_0001>
module attributes {stable_mosaic.version = 11 : i64} {
  func.func @_residual_block_kernel(%arg0: i32, %arg1: memref<2x16x64xf32, #tpu.memory_space<vmem>>, %arg2: memref<3x64x56xf32, #tpu.memory_space<vmem>>, %arg3: memref<1x56xf32, #tpu.memory_space<vmem>>, %arg4: memref<3x56x48xf32, #tpu.memory_space<vmem>>, %arg5: memref<1x48xf32, #tpu.memory_space<vmem>>, %arg6: memref<1x24x48xf32, #tpu.memory_space<vmem>>) attributes {dimension_semantics = [#tpu.dimension_semantics<parallel>], iteration_bounds = array<i64: 1>, scalar_prefetch = 0 : i64, scratch_operands = 0 : i64, tpu.core_type = #tpu.core_type<tc>, window_params = [{transform_indices = @transform_0, window_bounds = array<i64: 2, 16, 64>}, {pipeline_mode = #tpu.pipeline_mode<synchronous>, transform_indices = @transform_1, window_bounds = array<i64: 3, 64, 56>}, {pipeline_mode = #tpu.pipeline_mode<synchronous>, transform_indices = @transform_2, window_bounds = array<i64: 1, 56>}, {pipeline_mode = #tpu.pipeline_mode<synchronous>, transform_indices = @transform_3, window_bounds = array<i64: 3, 56, 48>}, {pipeline_mode = #tpu.pipeline_mode<synchronous>, transform_indices = @transform_4, window_bounds = array<i64: 1, 48>}, {transform_indices = @transform_5, window_bounds = array<i64: 1, 24, 48>}]} {
    %c0 = arith.constant 0 : index
    %c0_0 = arith.constant 0 : index
    %c0_1 = arith.constant 0 : index
    %0 = vector.load %arg1[%c0, %c0_0, %c0_1] : memref<2x16x64xf32, #tpu.memory_space<vmem>>, vector<2x16x64xf32>
    %1 = vector.extract_strided_slice %0 {offsets = [0, 0, 0], sizes = [2, 14, 64], strides = [1, 1, 1]} : vector<2x16x64xf32> to vector<2x14x64xf32>
    %2 = vector.shape_cast %1 : vector<2x14x64xf32> to vector<28x64xf32>
    %c0_2 = arith.constant 0 : index
    %c0_3 = arith.constant 0 : index
    %c0_4 = arith.constant 0 : index
    %3 = vector.load %arg2[%c0_2, %c0_3, %c0_4] : memref<3x64x56xf32, #tpu.memory_space<vmem>>, vector<1x64x56xf32>
    %4 = vector.shape_cast %3 : vector<1x64x56xf32> to vector<64x56xf32>
    %cst = arith.constant dense<0.000000e+00> : vector<28x56xf32>
    %5 = tpu.matmul %2, %4, %cst {dimension_numbers = #tpu.dot_dimension_numbers<[1], [0], [0], [1], [0, 0, 1, 1], [], []>} : vector<28x64xf32>, vector<64x56xf32>, vector<28x56xf32> -> vector<28x56xf32>
    %6 = vector.extract_strided_slice %0 {offsets = [0, 1, 0], sizes = [2, 14, 64], strides = [1, 1, 1]} : vector<2x16x64xf32> to vector<2x14x64xf32>
    %7 = vector.shape_cast %6 : vector<2x14x64xf32> to vector<28x64xf32>
    %c1 = arith.constant 1 : index
    %c0_5 = arith.constant 0 : index
    %c0_6 = arith.constant 0 : index
    %8 = vector.load %arg2[%c1, %c0_5, %c0_6] : memref<3x64x56xf32, #tpu.memory_space<vmem>>, vector<1x64x56xf32>
    %9 = vector.shape_cast %8 : vector<1x64x56xf32> to vector<64x56xf32>
    %cst_7 = arith.constant dense<0.000000e+00> : vector<28x56xf32>
    %10 = tpu.matmul %7, %9, %cst_7 {dimension_numbers = #tpu.dot_dimension_numbers<[1], [0], [0], [1], [0, 0, 1, 1], [], []>} : vector<28x64xf32>, vector<64x56xf32>, vector<28x56xf32> -> vector<28x56xf32>
    %11 = arith.addf %5, %10 : vector<28x56xf32>
    %12 = vector.extract_strided_slice %0 {offsets = [0, 2, 0], sizes = [2, 14, 64], strides = [1, 1, 1]} : vector<2x16x64xf32> to vector<2x14x64xf32>
    %13 = vector.shape_cast %12 : vector<2x14x64xf32> to vector<28x64xf32>
    %c2 = arith.constant 2 : index
    %c0_8 = arith.constant 0 : index
    %c0_9 = arith.constant 0 : index
    %14 = vector.load %arg2[%c2, %c0_8, %c0_9] : memref<3x64x56xf32, #tpu.memory_space<vmem>>, vector<1x64x56xf32>
    %15 = vector.shape_cast %14 : vector<1x64x56xf32> to vector<64x56xf32>
    %cst_10 = arith.constant dense<0.000000e+00> : vector<28x56xf32>
    %16 = tpu.matmul %13, %15, %cst_10 {dimension_numbers = #tpu.dot_dimension_numbers<[1], [0], [0], [1], [0, 0, 1, 1], [], []>} : vector<28x64xf32>, vector<64x56xf32>, vector<28x56xf32> -> vector<28x56xf32>
    %17 = arith.addf %11, %16 : vector<28x56xf32>
    %c0_11 = arith.constant 0 : index
    %c0_12 = arith.constant 0 : index
    %18 = vector.load %arg3[%c0_11, %c0_12] : memref<1x56xf32, #tpu.memory_space<vmem>>, vector<1x56xf32>
    %19 = vector.broadcast %18 : vector<1x56xf32> to vector<28x56xf32>
    %20 = arith.addf %17, %19 : vector<28x56xf32>
    %cst_13 = arith.constant 0.000000e+00 : f32
    %21 = vector.broadcast %cst_13 : f32 to vector<28x56xf32>
    %22 = arith.maximumf %20, %21 : vector<28x56xf32>
    %23 = vector.shape_cast %22 : vector<28x56xf32> to vector<2x14x56xf32>
    %24 = vector.extract_strided_slice %23 {offsets = [0, 0, 0], sizes = [2, 12, 56], strides = [1, 1, 1]} : vector<2x14x56xf32> to vector<2x12x56xf32>
    %25 = vector.shape_cast %24 : vector<2x12x56xf32> to vector<24x56xf32>
    %c0_14 = arith.constant 0 : index
    %c0_15 = arith.constant 0 : index
    %c0_16 = arith.constant 0 : index
    %26 = vector.load %arg4[%c0_14, %c0_15, %c0_16] : memref<3x56x48xf32, #tpu.memory_space<vmem>>, vector<1x56x48xf32>
    %27 = vector.shape_cast %26 : vector<1x56x48xf32> to vector<56x48xf32>
    %cst_17 = arith.constant dense<0.000000e+00> : vector<24x48xf32>
    %28 = tpu.matmul %25, %27, %cst_17 {dimension_numbers = #tpu.dot_dimension_numbers<[1], [0], [0], [1], [0, 0, 1, 1], [], []>} : vector<24x56xf32>, vector<56x48xf32>, vector<24x48xf32> -> vector<24x48xf32>
    %29 = vector.extract_strided_slice %23 {offsets = [0, 1, 0], sizes = [2, 12, 56], strides = [1, 1, 1]} : vector<2x14x56xf32> to vector<2x12x56xf32>
    %30 = vector.shape_cast %29 : vector<2x12x56xf32> to vector<24x56xf32>
    %c1_18 = arith.constant 1 : index
    %c0_19 = arith.constant 0 : index
    %c0_20 = arith.constant 0 : index
    %31 = vector.load %arg4[%c1_18, %c0_19, %c0_20] : memref<3x56x48xf32, #tpu.memory_space<vmem>>, vector<1x56x48xf32>
    %32 = vector.shape_cast %31 : vector<1x56x48xf32> to vector<56x48xf32>
    %cst_21 = arith.constant dense<0.000000e+00> : vector<24x48xf32>
    %33 = tpu.matmul %30, %32, %cst_21 {dimension_numbers = #tpu.dot_dimension_numbers<[1], [0], [0], [1], [0, 0, 1, 1], [], []>} : vector<24x56xf32>, vector<56x48xf32>, vector<24x48xf32> -> vector<24x48xf32>
    %34 = arith.addf %28, %33 : vector<24x48xf32>
    %35 = vector.extract_strided_slice %23 {offsets = [0, 2, 0], sizes = [2, 12, 56], strides = [1, 1, 1]} : vector<2x14x56xf32> to vector<2x12x56xf32>
    %36 = vector.shape_cast %35 : vector<2x12x56xf32> to vector<24x56xf32>
    %c2_22 = arith.constant 2 : index
    %c0_23 = arith.constant 0 : index
    %c0_24 = arith.constant 0 : index
    %37 = vector.load %arg4[%c2_22, %c0_23, %c0_24] : memref<3x56x48xf32, #tpu.memory_space<vmem>>, vector<1x56x48xf32>
    %38 = vector.shape_cast %37 : vector<1x56x48xf32> to vector<56x48xf32>
    %cst_25 = arith.constant dense<0.000000e+00> : vector<24x48xf32>
    %39 = tpu.matmul %36, %38, %cst_25 {dimension_numbers = #tpu.dot_dimension_numbers<[1], [0], [0], [1], [0, 0, 1, 1], [], []>} : vector<24x56xf32>, vector<56x48xf32>, vector<24x48xf32> -> vector<24x48xf32>
    %40 = arith.addf %34, %39 : vector<24x48xf32>
    %c0_26 = arith.constant 0 : index
    %c0_27 = arith.constant 0 : index
    %41 = vector.load %arg5[%c0_26, %c0_27] : memref<1x48xf32, #tpu.memory_space<vmem>>, vector<1x48xf32>
    %42 = vector.broadcast %41 : vector<1x48xf32> to vector<24x48xf32>
    %43 = arith.addf %40, %42 : vector<24x48xf32>
    %44 = vector.extract_strided_slice %0 {offsets = [0, 2, 8], sizes = [2, 12, 48], strides = [1, 1, 1]} : vector<2x16x64xf32> to vector<2x12x48xf32>
    %45 = vector.shape_cast %44 : vector<2x12x48xf32> to vector<24x48xf32>
    %46 = arith.addf %43, %45 : vector<24x48xf32>
    %cst_28 = arith.constant 0.000000e+00 : f32
    %47 = vector.broadcast %cst_28 : f32 to vector<24x48xf32>
    %48 = arith.maximumf %46, %47 : vector<24x48xf32>
    %49 = vector.shape_cast %48 : vector<24x48xf32> to vector<1x24x48xf32>
    %c0_29 = arith.constant 0 : index
    %c0_30 = arith.constant 0 : index
    %c0_31 = arith.constant 0 : index
    %50 = vector.load %arg6[%c0_29, %c0_30, %c0_31] : memref<1x24x48xf32, #tpu.memory_space<vmem>>, vector<1x24x48xf32>
    tpu.vector_store %arg6[%c0_29, %c0_30, %c0_31], %49 {strides = array<i32>} : memref<1x24x48xf32, #tpu.memory_space<vmem>>, vector<1x24x48xf32>,
    return
  }
  func.func @transform_0(%arg0: i32) -> (i32, i32, i32) {
    %c0_i32 = arith.constant 0 : i32
    %c0_i32_0 = arith.constant 0 : i32
    %c0_i32_1 = arith.constant 0 : i32
    return %arg0, %c0_i32, %c0_i32_0 : i32, i32, i32
  }
  func.func @transform_1(%arg0: i32) -> (i32, i32, i32) {
    %c0_i32 = arith.constant 0 : i32
    %c0_i32_0 = arith.constant 0 : i32
    %c0_i32_1 = arith.constant 0 : i32
    %c0_i32_2 = arith.constant 0 : i32
    return %c0_i32, %c0_i32_0, %c0_i32_1 : i32, i32, i32
  }
  func.func @transform_2(%arg0: i32) -> (i32, i32) {
    %c0_i32 = arith.constant 0 : i32
    %c0_i32_0 = arith.constant 0 : i32
    %c0_i32_1 = arith.constant 0 : i32
    return %c0_i32, %c0_i32_0 : i32, i32
  }
  func.func @transform_3(%arg0: i32) -> (i32, i32, i32) {
    %c0_i32 = arith.constant 0 : i32
    %c0_i32_0 = arith.constant 0 : i32
    %c0_i32_1 = arith.constant 0 : i32
    %c0_i32_2 = arith.constant 0 : i32
    return %c0_i32, %c0_i32_0, %c0_i32_1 : i32, i32, i32
  }
  func.func @transform_4(%arg0: i32) -> (i32, i32) {
    %c0_i32 = arith.constant 0 : i32
    %c0_i32_0 = arith.constant 0 : i32
    %c0_i32_1 = arith.constant 0 : i32
    return %c0_i32, %c0_i32_0 : i32, i32
  }
  func.func @transform_5(%arg0: i32) -> (i32, i32, i32) {
    %c0_i32 = arith.constant 0 : i32
    %c0_i32_0 = arith.constant 0 : i32
    %c0_i32_1 = arith.constant 0 : i32
    return %arg0, %c0_i32, %c0_i32_0 : i32, i32, i32
  }
}

</mosaic_0001>

<bundles_post_ra>
// kernel: tpu_custom_call.1
= control target key start
LH: loop header
LB: loop body
LE: loop exit
PB: predicated region body
PF: predicated region fallthrough
CT: control target
= control target key end

     0   :  { %vm49_vm0 = vcmask 1040384   ;;  %vm50_vm1 = vcmask 1042434   ;;  %vm52_vm2 = vcmask 1044484   ;;  %vm54_vm3 = vcmask 1046534   ;;  %s1228_s0 = inlined_call_operand.vmem [shape: f32[2,16,64], index: 0, kind: input, shape index: {}]   ;;  %s1229_s1 = inlined_call_operand.vmem [shape: f32[3,64,56], index: 1, kind: input, shape index: {}]   ;;  %s1230_s2 = inlined_call_operand.vmem [shape: f32[1,56], index: 2, kind: input, shape index: {}]   ;;  %s1231_s3 = inlined_call_operand.vmem [shape: f32[3,56,48], index: 3, kind: input, shape index: {}]   ;;  %s1232_s4 = inlined_call_operand.vmem [shape: f32[1,48], index: 4, kind: input, shape index: {}]   ;;  %s1233_s5 = inlined_call_operand.hbm [shape: f32[1,24,48], index: 5, kind: output, shape index: {}]  }
   0x1   :  { %v673_v0 = vld [vmem:[%s1229_s1 + $0x78] sm:$0xff]  ;;  %v672_v1 = vld [vmem:[%s1229_s1 + $0x70] sm:$0xff]  ;;  %v671_v2 = vld [vmem:[%s1229_s1 + $0x68] sm:$0xff] }
   0x2   :  { %719 = vmatpush.msra.mxu1 %v673_v0  ;;  %151 = vmatpush.msra.mxu0 %v673_v0  ;;  %v805_v3 = vld [vmem:[%s1228_s0] sm:$0xff]  ;;  %v810_v4 = vld [vmem:[%s1228_s0 + $0x8] sm:$0xff]  ;;  %v815_v5 = vld [vmem:[%s1228_s0 + $0x10] sm:$0xff] }
   0x3   :  { %v29_v6 = vrot.slane %v805_v3, 2  ;;  %v819_v7 = vrot.slane %v805_v3, 4  ;;  %v822_v8 = vrot.slane %v805_v3, 6  ;;  %v670_v9 = vld [vmem:[%s1229_s1 + $0x60] sm:$0xff]  ;;  %v34_v10 = vrot.slane %v815_v5, 2  ;;  %vm51_vm4 = vmor %vm49_vm0, %vm50_vm1  ;;  %v669_v16 = vld [vmem:[%s1229_s1 + $0x58] sm:$0xff] }
   0x4   :  { %720 = vmatpush.msra.mxu1 %v672_v1  ;;  %152 = vmatpush.msra.mxu0 %v672_v1  ;;  %v829_v11 = vrot.slane %v815_v5, 4  ;;  %vm53_vm5 = vmor %vm51_vm4, %vm52_vm2  ;;  %v664_v12 = vrot.slane %v805_v3, 9  ;;  %v842_v17 = vrot.slane %v815_v5, 6  ;;  %v67_v19 = vrot.slane %v810_v4, 7  ;;  %v855_v21 = vld [vmem:[%s1228_s0 + $0x18] sm:$0xff]  ;;  %v668_v26 = vld [vmem:[%s1229_s1 + $0x50] sm:$0xff] }
   0x5   :  { %v58_v13 = vrot.slane %v29_v6, 7  ;;  %v61_v14 = vrot.slane %v819_v7, 7  ;;  %v64_v15 = vrot.slane %v822_v8, 7  ;;  %vm845_vm6 = vmor %vm53_vm5, %vm54_vm3  ;;  %v80_v20 = vrot.slane %v34_v10, 7 }
   0x6   :  { %721 = vmatpush.msra.mxu1 %v671_v2  ;;  %153 = vmatpush.msra.mxu0 %v671_v2  ;;  %v83_v27 = vrot.slane %v829_v11, 7 }
   0x7   :  { %v59_v22 = vsel %vm845_vm6, %v664_v12, %v58_v13  ;;  %v60_v23 = vrot.slane %v58_v13, 2  ;;  %v63_v24 = vrot.slane %v61_v14, 2  ;;  %v66_v25 = vrot.slane %v64_v15, 2 }
   0x8   :  { %722 = vmatpush.msra.mxu1 %v670_v9  ;;  %154 = vmatpush.msra.mxu0 %v670_v9  ;;  %109 = vst [vmem:[#allocation1] ss:$4 sm:$0xff] %v59_v22 }
   0x9   :  { %v62_v28 = vsel %vm845_vm6, %v60_v23, %v61_v14  ;;  %v65_v29 = vsel %vm845_vm6, %v63_v24, %v64_v15  ;;  %v68_v30 = vsel %vm845_vm6, %v66_v25, %v67_v19 }
   0xa   :  { %723 = vmatpush.msra.mxu1 %v669_v16  ;;  %155 = vmatpush.msra.mxu0 %v669_v16 }
   0xb   :  { %10 = vsyncpa [#allocation3], 0  ;;  %v667_v31 = vld [vmem:[%s1229_s1 + $0x48] sm:$0xff]  ;;  %v666_v32 = vld [vmem:[%s1229_s1 + $0x40] sm:$0xff]  ;;  %v37_v33 = vrot.slane %v855_v21, 2  ;;  %v86_v34 = vrot.slane %v842_v17, 7 }
   0xc   :  { %111 = vst [vmem:[#allocation1 + $0x1] ss:$4 sm:$0xff] %v62_v28  ;;  %724 = vmatpush.msra.mxu1 %v668_v26  ;;  %v82_v35 = vrot.slane %v80_v20, 2  ;;  %v32_v36 = vrot.slane %v810_v4, 2  ;;  %v879_v37 = vrot.slane %v810_v4, 4  ;;  %v882_v38 = vrot.slane %v810_v4, 6  ;;  %156 = vmatpush.msra.mxu0 %v668_v26 }
   0xd   :  { %113 = vst [vmem:[#allocation1 + $0x2] ss:$4 sm:$0xff] %v65_v29  ;;  %v85_v39 = vrot.slane %v83_v27, 2  ;;  %v89_v40 = vrot.slane %v855_v21, 7  ;;  %v69_v41 = vrot.slane %v67_v19, 2  ;;  %v665_v42 = vrot.slane %v815_v5, 9 }
   0xe   :  { %115 = vst [vmem:[#allocation1 + $0x3] ss:$4 sm:$0xff] %v68_v30  ;;  %725 = vmatpush.msra.mxu1 %v667_v31  ;;  %v46_v43 = vld [vmem:[%s1229_s1 + $0x38] sm:$0xff]  ;;  %v890_v44 = vrot.slane %v855_v21, 4  ;;  %v70_v45 = vrot.slane %v32_v36, 7  ;;  %v73_v46 = vrot.slane %v879_v37, 7  ;;  %157 = vmatpush.msra.mxu0 %v667_v31  ;;  %v84_v55 = vsel %vm845_vm6, %v82_v35, %v83_v27 }
   0xf   :  { %v76_v47 = vrot.slane %v882_v38, 7  ;;  %v88_v48 = vrot.slane %v86_v34, 2  ;;  %v92_v49 = vrot.slane %v37_v33, 7  ;;  %v81_v50 = vsel %vm845_vm6, %v665_v42, %v80_v20  ;;  %v45_v51 = vld [vmem:[%s1229_s1 + $0x30] sm:$0xff]  ;;  %v44_v60 = vld [vmem:[%s1229_s1 + $0x28] sm:$0xff]  ;;  %v43_v13 = vld [vmem:[%s1229_s1 + $0x20] sm:$0xff] }
  0x10   :  { %vm594_vm7 = vcmask 1041408   ;;  %726 = vmatpush.msra.mxu1 %v666_v32  ;;  %v71_v52 = vsel %vm845_vm6, %v69_v41, %v70_v45  ;;  %v72_v53 = vrot.slane %v70_v45, 2  ;;  %v75_v54 = vrot.slane %v73_v46, 2  ;;  %123 = vst [vmem:[#allocation1 + $0x23] ss:$4 sm:$0xff] %v81_v50  ;;  %158 = vmatpush.msra.mxu0 %v666_v32  ;;  %v42_v20 = vld [vmem:[%s1229_s1 + $0x18] sm:$0xff] }
  0x11   :  { %vm595_vm8 = vcmask 1045508   ;;  %v91_v56 = vrot.slane %v89_v40, 2  ;;  %117 = vst [vmem:[#allocation1 + $0x20] ss:$4 sm:$0xff] %v71_v52  ;;  %v597_v58 = vrot.slane %v822_v8, 4  ;;  %v598_v59 = vrot.slane %v819_v7, 6 }
  0x12   :  { %213 = vmatpush.msrb.mxu1 %v46_v43  ;;  %vm907_vm9 = vmor %vm594_vm7, %vm595_vm8  ;;  %v917_v61 = vrot.slane %v855_v21, 6  ;;  %v74_v62 = vsel %vm845_vm6, %v72_v53, %v73_v46  ;;  %v77_v63 = vsel %vm845_vm6, %v75_v54, %v76_v47  ;;  %v95_v0 = vrot.slane %v890_v44, 7  ;;  %v41_v22 = vld [vmem:[%s1229_s1 + $0x10] sm:$0xff]  ;;  %v689_v23 = vld [vmem:[%s1229_s1 + $0xb8] sm:$0xff]  ;;  %s652_s15 = sshll.u32 %s1233_s5, 4  ;;  %s761_s16 = smov 128   ;;  %s653_s15 = int_to_ptr.hbm [resolvable:$true] %s652_s15 }
  0x13   :  { %v87_v1 = vsel %vm845_vm6, %v85_v39, %v86_v34  ;;  %vm134_vm10 = vcmask 523264   ;;  %119 = vst [vmem:[#allocation1 + $0x21] ss:$4 sm:$0xff] %v74_v62  ;;  %v930_v2 = vsel %vm907_vm9, %v597_v58, %v598_v59  ;;  %v90_v9 = vsel %vm845_vm6, %v88_v48, %v89_v40  ;;  %v688_v24 = vld [vmem:[%s1229_s1 + $0xb0] sm:$0xff]  ;;  %309 = vmatpush.msra.mxu2 %v689_v23  ;;  %v40_v27 = vld [vmem:[%s1229_s1 + $0x8] sm:$0xff]  ;;  %v39_v30 = vld [vmem:[%s1229_s1] sm:$0xff] }
  0x14   :  { %214 = vmatpush.msrb.mxu1 %v45_v51  ;;  %121 = vst [vmem:[#allocation1 + $0x22] ss:$4 sm:$0xff] %v77_v63  ;;  %v93_v14 = vsel %vm845_vm6, %v91_v56, %v92_v49  ;;  %v94_v15 = vrot.slane %v92_v49, 2  ;;  %v97_v16 = vrot.slane %v95_v0, 2  ;;  %v98_v19 = vrot.slane %v917_v61, 7  ;;  %v687_v28 = vld [vmem:[%s1229_s1 + $0xa8] sm:$0xff] }
  0x15   :  { %v124_v12 = vld.sshfl [vmem:[#allocation1] sm:$0xff pattern:$0x73625140]  ;;  %310 = vmatpush.msra.mxu2 %v688_v24  ;;  %v685_v35 = vld [vmem:[%s1229_s1 + $0x98] sm:$0xff]  ;;  %v684_v39 = vld [vmem:[%s1229_s1 + $0x90] sm:$0xff]  ;;  %vm435_vm11 = vcmask 457728  }
  0x16   :  { %126 = vst [vmem:[#allocation1] ss:$4 sm:$0xff] %v84_v55  ;;  %215 = vmatpush.msrb.mxu1 %v44_v60  ;;  %674 = vmatmul.msk.f32.vlgmr.msra.gmra.mxu0 %vm134_vm10, %v124_v12  ;;  %v96_v25 = vsel %vm845_vm6, %v94_v15, %v95_v0  ;;  %v99_v26 = vsel %vm845_vm6, %v97_v16, %v98_v19  ;;  %v686_v31 = vld [vmem:[%s1229_s1 + $0xa0] sm:$0xff]  ;;  %v702_v60 = vld [vmem:[%s1231_s3 + $0x68] sm:$0xff]  ;;  %v700_v63 = vld [vmem:[%s1231_s3 + $0x58] sm:$0xff]  ;;  %vm642_vm12 = vcmask 392192  }
  0x17   :  { %127 = vst [vmem:[#allocation1 + $0x1] ss:$4 sm:$0xff] %v87_v1  ;;  %311 = vmatpush.msra.mxu2 %v687_v28  ;;  %v682_v40 = vld [vmem:[%s1229_s1 + $0x80] sm:$0xff]  ;;  %451 = vmatpush.msra.mxu3 %v702_v60  ;;  %v699_v0 = vld [vmem:[%s1231_s3 + $0x50] sm:$0xff]  ;;  %v696_v23 = vld [vmem:[%s1231_s3 + $0x38] sm:$0xff]  ;;  %s762_s17 = smov 8  }
  0x18   :  { %128 = vst [vmem:[#allocation1 + $0x2] ss:$4 sm:$0xff] %v90_v9  ;;  %216 = vmatpush.msrb.mxu1 %v43_v13  ;;  %v701_v62 = vld [vmem:[%s1231_s3 + $0x60] sm:$0xff]  ;;  %v698_v9 = vld [vmem:[%s1231_s3 + $0x48] sm:$0xff] }
  0x19   :  { %129 = vst [vmem:[#allocation1 + $0x3] ss:$4 sm:$0xff] %v93_v14  ;;  %312 = vmatpush.msra.mxu2 %v686_v31  ;;  %452 = vmatpush.msra.mxu3 %v701_v62  ;;  %v697_v13 = vld [vmem:[%s1231_s3 + $0x40] sm:$0xff] }
  0x1a   :  { %217 = vmatpush.msrb.mxu1 %v42_v20  ;;  %v1037_v15 = vld [vmem:[%s1230_s2] ss:$0 sm:$0xff] }
  0x1b   :  { %v125_v29 = vld.sshfl [vmem:[#allocation1 + $0x20] sm:$0xff pattern:$0x73625140]  ;;  %313 = vmatpush.msra.mxu2 %v685_v35  ;;  %453 = vmatpush.msra.mxu3 %v700_v63 }
  0x1c   :  { %218 = vmatpush.msrb.mxu1 %v41_v22  ;;  %130 = vst [vmem:[#allocation1 + $0x20] ss:$4 sm:$0xff] %v96_v25  ;;  %v364_v60 = vld [vmem:[%s1231_s3 + $0x20] sm:$0xff] }
  0x1d   :  { %131 = vst [vmem:[#allocation1 + $0x21] ss:$4 sm:$0xff] %v99_v26  ;;  %314 = vmatpush.msra.mxu2 %v684_v39  ;;  %454 = vmatpush.msra.mxu3 %v699_v0 }
  0x1e   :  { %219 = vmatpush.msrb.mxu1 %v40_v27  ;;  %675 = vmatmul.msk.f32.gmra.mxu0 %vm134_vm10, %v125_v29 }
  0x1f   :  { %455 = vmatpush.msra.mxu3 %v698_v9  ;;  %v363_v9 = vld [vmem:[%s1231_s3 + $0x18] sm:$0xff] }
  0x20   :  { %v132_v32 = vld.sshfl [vmem:[#allocation1] sm:$0xff pattern:$0x73625140]  ;;  %220 = vmatpush.msrb.mxu1 %v39_v30 }
  0x21   :  { %676 = vmatmul.msk.f32.vlgmr.msra.gmra.mxu1 %vm134_vm10, %v132_v32  ;;  %172 = vst [vmem:[#allocation1] ss:$4 sm:$0xff] %v805_v3  ;;  %456 = vmatpush.msra.mxu3 %v697_v13 }
  0x22   :  { %174 = vst [vmem:[#allocation1 + $0x1] ss:$4 sm:$0xff] %v29_v6  ;;  %v683_v6 = vld [vmem:[%s1229_s1 + $0x88] sm:$0xff] }
  0x23   :  { %176 = vst [vmem:[#allocation1 + $0x2] ss:$4 sm:$0xff] %v819_v7  ;;  %315 = vmatpush.msra.mxu2 %v683_v6  ;;  %457 = vmatpush.msra.mxu3 %v696_v23 }
  0x24   :  { %178 = vst [vmem:[#allocation1 + $0x3] ss:$4 sm:$0xff] %v822_v8  ;;  %v133_v34 = vld.sshfl [vmem:[#allocation1 + $0x20] sm:$0xff pattern:$0x73625140] }
  0x25   :  { %184 = vst [vmem:[#allocation1 + $0x22] ss:$4 sm:$0xff] %v879_v37  ;;  %316 = vmatpush.msra.mxu2 %v682_v40 }
  0x26   :  { %186 = vst [vmem:[#allocation1 + $0x23] ss:$4 sm:$0xff] %v815_v5 }
  0x27   :  { %180 = vst [vmem:[#allocation1 + $0x20] ss:$4 sm:$0xff] %v810_v4 }
  0x28   :  { %182 = vst [vmem:[#allocation1 + $0x21] ss:$4 sm:$0xff] %v32_v36 }
  0x29   :  { %677 = vmatmul.msk.f32.gmra.mxu1 %vm134_vm10, %v133_v34 }
  0x2b   :  { %v187_v8 = vld.sshfl [vmem:[#allocation1] sm:$0xff pattern:$0x73625140] }
  0x2c   :  { %189 = vst [vmem:[#allocation1] ss:$4 sm:$0xff] %v34_v10 }
  0x2d   :  { %190 = vst [vmem:[#allocation1 + $0x1] ss:$4 sm:$0xff] %v829_v11 }
  0x2e   :  { %191 = vst [vmem:[#allocation1 + $0x2] ss:$4 sm:$0xff] %v842_v17 }
  0x2f   :  { %192 = vst [vmem:[#allocation1 + $0x3] ss:$4 sm:$0xff] %v855_v21  ;;  %v188_v36 = vld.sshfl [vmem:[#allocation1 + $0x20] sm:$0xff pattern:$0x73625140] }
  0x30   :  { %193 = vst [vmem:[#allocation1 + $0x20] ss:$4 sm:$0xff] %v37_v33 }
  0x31   :  { %678 = vmatmul.msk.f32.vlgmr.msrb.gmra.mxu1 %vm134_vm10, %v187_v8  ;;  %194 = vst [vmem:[#allocation1 + $0x21] ss:$4 sm:$0xff] %v890_v44 }
  0x36   :  { %v195_v10 = vld.sshfl [vmem:[#allocation1] sm:$0xff pattern:$0x73625140] }
  0x37   :  { %234 = vst.sshfl [vmem:[#allocation1] sm:$0xff pattern:$0x73625140] %v805_v3 }
  0x38   :  { %v196_v41 = vld.sshfl [vmem:[#allocation1 + $0x20] sm:$0xff pattern:$0x73625140] }
  0x39   :  { %679 = vmatmul.msk.f32.gmra.mxu1 %vm134_vm10, %v188_v36  ;;  %235 = vst.sshfl [vmem:[#allocation1 + $0x20] sm:$0xff pattern:$0x73625140] %v810_v4 }
  0x3e   :  { %v237_v42 = vld [vmem:[#allocation1 + $0x1] ss:$4 sm:$0xff]  ;;  %v239_v43 = vld [vmem:[#allocation1 + $0x2] ss:$4 sm:$0xff]  ;;  %v241_v45 = vld [vmem:[#allocation1 + $0x3] ss:$4 sm:$0xff] }
  0x3f   :  { %250 = vst.sshfl [vmem:[#allocation1] sm:$0xff pattern:$0x73625140] %v815_v5 }
  0x40   :  { %268 = vst [vmem:[#allocation1] ss:$4 sm:$0xff] %v237_v42  ;;  %v243_v46 = vld [vmem:[#allocation1 + $0x20] ss:$4 sm:$0xff]  ;;  %v245_v33 = vld [vmem:[#allocation1 + $0x21] ss:$4 sm:$0xff] }
  0x41   :  { %680 = vmatmul.msk.f32.gmra.mxu1 %vm134_vm10, %v195_v10  ;;  %v247_v47 = vld [vmem:[#allocation1 + $0x22] ss:$4 sm:$0xff]  ;;  %v249_v48 = vld [vmem:[#allocation1 + $0x23] ss:$4 sm:$0xff] }
  0x42   :  { %251 = vst.sshfl [vmem:[#allocation1 + $0x20] sm:$0xff pattern:$0x73625140] %v855_v21 }
  0x46   :  { %v252_v3 = vld [vmem:[#allocation1 + $0x1] ss:$4 sm:$0xff]  ;;  %v253_v49 = vld [vmem:[#allocation1 + $0x2] ss:$4 sm:$0xff]  ;;  %v254_v50 = vld [vmem:[#allocation1 + $0x3] ss:$4 sm:$0xff] }
  0x47   :  { %270 = vst [vmem:[#allocation1 + $0x1] ss:$4 sm:$0xff] %v239_v43 }
  0x48   :  { %272 = vst [vmem:[#allocation1 + $0x2] ss:$4 sm:$0xff] %v241_v45 }
  0x49   :  { %681 = vmatmul.msk.f32.gmra.mxu1 %vm134_vm10, %v196_v41  ;;  %274 = vst [vmem:[#allocation1 + $0x3] ss:$4 sm:$0xff] %v243_v46  ;;  %v255_v4 = vld [vmem:[#allocation1 + $0x20] ss:$4 sm:$0xff]  ;;  %v256_v51 = vld [vmem:[#allocation1 + $0x21] ss:$4 sm:$0xff] }
  0x4a   :  { %v257_v5 = vld [vmem:[#allocation1 + $0x22] ss:$4 sm:$0xff]  ;;  %v258_v52 = vld [vmem:[#allocation1 + $0x23] ss:$4 sm:$0xff]  ;;  %276 = vst [vmem:[#allocation1 + $0x20] ss:$4 sm:$0xff] %v245_v33 }
  0x4b   :  { %278 = vst [vmem:[#allocation1 + $0x21] ss:$4 sm:$0xff] %v247_v47 }
  0x4c   :  { %280 = vst [vmem:[#allocation1 + $0x22] ss:$4 sm:$0xff] %v249_v48 }
  0x4d   :  { %282 = vst [vmem:[#allocation1 + $0x23] ss:$4 sm:$0xff] %v252_v3 }
  0x50   :  { %v283_v53 = vld.sshfl [vmem:[#allocation1] sm:$0xff pattern:$0x73625140] }
  0x51   :  { %285 = vst [vmem:[#allocation1] ss:$4 sm:$0xff] %v253_v49  ;;  %690 = vmatmul.msk.f32.vlgmr.msra.gmra.mxu2 %vm134_vm10, %v283_v53  ;;  %v366_v49 = vld [vmem:[%s1231_s3 + $0x30] sm:$0xff]  ;;  %v365_v53 = vld [vmem:[%s1231_s3 + $0x28] sm:$0xff] }
  0x52   :  { %286 = vst [vmem:[#allocation1 + $0x1] ss:$4 sm:$0xff] %v254_v50  ;;  %505 = vmatpush.msrb.mxu3 %v366_v49 }
  0x53   :  { %287 = vst [vmem:[#allocation1 + $0x2] ss:$4 sm:$0xff] %v255_v4 }
  0x54   :  { %288 = vst [vmem:[#allocation1 + $0x3] ss:$4 sm:$0xff] %v256_v51  ;;  %v284_v21 = vld.sshfl [vmem:[#allocation1 + $0x20] sm:$0xff pattern:$0x73625140]  ;;  %506 = vmatpush.msrb.mxu3 %v365_v53 }
  0x55   :  { %289 = vst [vmem:[#allocation1 + $0x20] ss:$4 sm:$0xff] %v257_v5  ;;  %v711_v53 = vld [vmem:[%s1231_s3 + $0x80] sm:$0xff] }
  0x56   :  { %290 = vst [vmem:[#allocation1 + $0x21] ss:$4 sm:$0xff] %v258_v52  ;;  %507 = vmatpush.msrb.mxu3 %v364_v60 }
  0x58   :  { %508 = vmatpush.msrb.mxu3 %v363_v9  ;;  %v605_v9 = vrot.slane %v842_v17, 4  ;;  %v600_v17 = vrot.slane %v598_v59, 4 }
  0x59   :  { %691 = vmatmul.msk.f32.gmra.mxu2 %vm134_vm10, %v284_v21 }
  0x5b   :  { %v291_v54 = vld.sshfl [vmem:[#allocation1] sm:$0xff pattern:$0x73625140] }
  0x5d   :  { %v292_v55 = vld.sshfl [vmem:[#allocation1 + $0x20] sm:$0xff pattern:$0x73625140] }
  0x61   :  { %692 = vmatmul.msk.f32.gmra.mxu2 %vm134_vm10, %v291_v54 }
  0x69   :  { %693 = vmatmul.msk.f32.gmra.mxu2 %vm134_vm10, %v292_v55 }
  0x93   :  { %v160_v12 = vpop.f32.mrf.mxu0 }
  0x9b   :  { %v163_v22 = vpop.f32.mrf.mxu0 }
  0x9e   :  { %v166_v56 = vpop.f32.mrf.mxu1 }
  0xa6   :  { %v1014_v58 = vpop.f32.mrf.mxu1 }
  0xae   :  { %v222_v1 = vpop.f32.mrf.mxu1 }
  0xaf   :  { %v223_v14 = vadd.f32 %v222_v1, %v160_v12 }
  0xb6   :  { %v225_v19 = vpop.f32.mrf.mxu1 }
  0xb7   :  { %v226_v26 = vadd.f32 %v225_v19, %v163_v22  ;;  %v362_v22 = vld [vmem:[%s1231_s3 + $0x10] sm:$0xff] }
  0xb8   :  { %509 = vmatpush.msrb.mxu3 %v362_v22 }
  0xbe   :  { %v228_v39 = vpop.f32.mrf.mxu1 }
  0xbf   :  { %v229_v45 = vadd.f32 %v228_v39, %v166_v56 }
  0xc6   :  { %v231_v62 = vpop.f32.mrf.mxu1 }
  0xc7   :  { %v232_v19 = vadd.f32 %v231_v62, %v1014_v58 }
  0xd4   :  { %v318_v16 = vpop.f32.mrf.mxu2 }
  0xd5   :  { %v330_v20 = vadd.f32 %v318_v16, %v223_v14 }
  0xd7   :  { %v338_v24 = vadd.f32 %v1037_v15, %v330_v20 }
  0xd9   :  { %v1043_v25 = vmax.f32 %v338_v24, 0.0 }
  0xdb   :  { %v1046_v27 = vrot.slane %v1043_v25, 2  ;;  %v1049_v28 = vrot.slane %v1043_v25, 4  ;;  %v1052_v29 = vrot.slane %v1043_v25, 6  ;;  %v694_v31 = vrot.slane %v1043_v25, 9 }
  0xdc   :  { %v321_v30 = vpop.f32.mrf.mxu2 }
  0xdd   :  { %v369_v32 = vrot.slane %v1046_v27, 7  ;;  %v372_v34 = vrot.slane %v1049_v28, 7  ;;  %v331_v35 = vadd.f32 %v321_v30, %v226_v26  ;;  %v375_v36 = vrot.slane %v1052_v29, 7 }
  0xdf   :  { %v370_v6 = vsel %vm845_vm6, %v694_v31, %v369_v32  ;;  %v371_v8 = vrot.slane %v369_v32, 2  ;;  %v374_v40 = vrot.slane %v372_v34, 2  ;;  %v339_v10 = vadd.f32 %v1037_v15, %v331_v35 }
  0xe0   :  { %413 = vst [vmem:[#allocation1] ss:$4 sm:$0xff] %v370_v6  ;;  %v377_v46 = vrot.slane %v375_v36, 2  ;;  %v361_v6 = vld [vmem:[%s1231_s3 + $0x8] sm:$0xff] }
  0xe1   :  { %v373_v41 = vsel %vm845_vm6, %v371_v8, %v372_v34  ;;  %v376_v42 = vsel %vm845_vm6, %v374_v40, %v375_v36  ;;  %v1065_v43 = vmax.f32 %v339_v10, 0.0  ;;  %510 = vmatpush.msrb.mxu3 %v361_v6  ;;  %v360_v40 = vld [vmem:[%s1231_s3] sm:$0xff] }
  0xe2   :  { %415 = vst [vmem:[#allocation1 + $0x1] ss:$4 sm:$0xff] %v373_v41 }
  0xe3   :  { %417 = vst [vmem:[#allocation1 + $0x2] ss:$4 sm:$0xff] %v376_v42  ;;  %v1068_v33 = vrot.slane %v1065_v43, 2  ;;  %v354_v47 = vrot.slane %v1065_v43, 4  ;;  %v378_v48 = vrot.slane %v1065_v43, 7  ;;  %v355_v4 = vrot.slane %v1065_v43, 6  ;;  %511 = vmatpush.msrb.mxu3 %v360_v40 }
  0xe4   :  { %v324_v3 = vpop.f32.mrf.mxu2  ;;  %v715_v42 = vld [vmem:[%s1231_s3 + $0xa0] sm:$0xff] }
  0xe5   :  { %v332_v50 = vadd.f32 %v324_v3, %v229_v45  ;;  %v379_v51 = vsel %vm845_vm6, %v377_v46, %v378_v48  ;;  %v380_v5 = vrot.slane %v378_v48, 2  ;;  %v381_v52 = vrot.slane %v1068_v33, 7  ;;  %567 = vmatpush.msrb.mxu0 %v715_v42  ;;  %v713_v3 = vld [vmem:[%s1231_s3 + $0x90] sm:$0xff] }
  0xe6   :  { %419 = vst [vmem:[#allocation1 + $0x3] ss:$4 sm:$0xff] %v379_v51  ;;  %v384_v56 = vrot.slane %v354_v47, 7  ;;  %v695_v1 = vrot.slane %v355_v4, 9 }
  0xe7   :  { %v340_v21 = vadd.f32 %v1037_v15, %v332_v50  ;;  %v382_v54 = vsel %vm845_vm6, %v380_v5, %v381_v52  ;;  %v383_v55 = vrot.slane %v381_v52, 2  ;;  %v712_v5 = vld [vmem:[%s1231_s3 + $0x88] sm:$0xff] }
  0xe8   :  { %421 = vst [vmem:[#allocation1 + $0x20] ss:$4 sm:$0xff] %v382_v54  ;;  %v710_v54 = vld [vmem:[%s1231_s3 + $0x78] sm:$0xff] }
  0xe9   :  { %v1090_v63 = vmax.f32 %v340_v21, 0.0  ;;  %v385_v0 = vsel %vm845_vm6, %v383_v55, %v384_v56  ;;  %v709_v55 = vld [vmem:[%s1231_s3 + $0x70] sm:$0xff] }
  0xea   :  { %423 = vst [vmem:[#allocation1 + $0x21] ss:$4 sm:$0xff] %v385_v0 }
  0xeb   :  { %v1100_v12 = vrot.slane %v1090_v63, 2  ;;  %v1103_v13 = vrot.slane %v1090_v63, 4  ;;  %v1106_v14 = vrot.slane %v1090_v63, 6  ;;  %v388_v16 = vrot.slane %v1090_v63, 7 }
  0xec   :  { %v327_v20 = vpop.f32.mrf.mxu2 }
  0xed   :  { %v389_v23 = vsel %vm845_vm6, %v695_v1, %v388_v16  ;;  %v390_v24 = vrot.slane %v388_v16, 2  ;;  %v391_v26 = vrot.slane %v1100_v12, 7  ;;  %v394_v30 = vrot.slane %v1103_v13, 7  ;;  %v428_v31 = vld.sshfl [vmem:[#allocation1] sm:$0xff pattern:$0x73625140] }
  0xee   :  { %425 = vst [vmem:[#allocation1 + $0x22] ss:$4 sm:$0xff] %v389_v23  ;;  %v333_v32 = vadd.f32 %v327_v20, %v232_v19  ;;  %v397_v39 = vrot.slane %v1106_v14, 7  ;;  %703 = vmatmul.msk.f32.vlgmr.msra.gmra.mxu3 %vm435_vm11, %v428_v31  ;;  %v603_v1 = vrot.slane %v879_v37, 6 }
  0xef   :  { %v392_v58 = vsel %vm845_vm6, %v390_v24, %v391_v26  ;;  %v393_v34 = vrot.slane %v391_v26, 2  ;;  %v396_v35 = vrot.slane %v394_v30, 2 }
  0xf0   :  { %427 = vst [vmem:[#allocation1 + $0x23] ss:$4 sm:$0xff] %v392_v58  ;;  %v341_v8 = vadd.f32 %v1037_v15, %v333_v32  ;;  %v714_v15 = vld [vmem:[%s1231_s3 + $0x98] sm:$0xff]  ;;  %v399_v46 = vrot.slane %v397_v39, 2  ;;  %s759_s3 = smov 120  }
  0xf1   :  { %v395_v36 = vsel %vm845_vm6, %v393_v34, %v394_v30  ;;  %v398_v10 = vsel %vm845_vm6, %v396_v35, %v397_v39  ;;  %568 = vmatpush.msrb.mxu0 %v714_v15 }
  0xf2   :  { %430 = vst [vmem:[#allocation1] ss:$4 sm:$0xff] %v395_v36  ;;  %v1132_v41 = vmax.f32 %v341_v8, 0.0 }
  0xf3   :  { %431 = vst [vmem:[#allocation1 + $0x1] ss:$4 sm:$0xff] %v398_v10  ;;  %569 = vmatpush.msrb.mxu0 %v713_v3 }
  0xf4   :  { %v359_v45 = vrot.slane %v1132_v41, 2  ;;  %v400_v48 = vrot.slane %v1132_v41, 7 }
  0xf5   :  { %570 = vmatpush.msrb.mxu0 %v712_v5 }
  0xf6   :  { %v401_v49 = vsel %vm845_vm6, %v399_v46, %v400_v48  ;;  %v402_v50 = vrot.slane %v400_v48, 2  ;;  %v403_v51 = vrot.slane %v359_v45, 7 }
  0xf7   :  { %v429_v52 = vld.sshfl [vmem:[#allocation1 + $0x20] sm:$0xff pattern:$0x73625140]  ;;  %432 = vst [vmem:[#allocation1 + $0x2] ss:$4 sm:$0xff] %v401_v49  ;;  %571 = vmatpush.msrb.mxu0 %v711_v53 }
  0xf8   :  { %482 = vst [vmem:[#allocation1 + $0x23] ss:$4 sm:$0xff] %v1090_v63  ;;  %704 = vmatmul.msk.f32.gmra.mxu3 %vm435_vm11, %v429_v52  ;;  %v404_v21 = vsel %vm845_vm6, %v402_v50, %v403_v51 }
  0xf9   :  { %476 = vst [vmem:[#allocation1 + $0x20] ss:$4 sm:$0xff] %v1065_v43  ;;  %572 = vmatpush.msrb.mxu0 %v710_v54 }
  0xfa   :  { %478 = vst [vmem:[#allocation1 + $0x21] ss:$4 sm:$0xff] %v1068_v33 }
  0xfb   :  { %480 = vst [vmem:[#allocation1 + $0x22] ss:$4 sm:$0xff] %v355_v4  ;;  %573 = vmatpush.msrb.mxu0 %v709_v55  ;;  %v610_v4 = vrot.slane %v917_v61, 4 }
  0xfc   :  { %433 = vst [vmem:[#allocation1 + $0x3] ss:$4 sm:$0xff] %v404_v21 }
 0x102   :  { %v484_v18 = vld.sshfl [vmem:[#allocation1 + $0x20] sm:$0xff pattern:$0x73625140] }
 0x103   :  { %v434_v56 = vld.sshfl [vmem:[#allocation1] sm:$0xff pattern:$0x73625140]  ;;  %538 = vst [vmem:[#allocation1 + $0x20] ss:$4 sm:$0xff] %v1068_v33  ;;  %v611_v33 = vrot.slane %v890_v44, 6 }
 0x104   :  { %468 = vst [vmem:[#allocation1] ss:$4 sm:$0xff] %v1043_v25  ;;  %705 = vmatmul.msk.f32.gmra.mxu3 %vm435_vm11, %v434_v56  ;;  %v606_v44 = vrot.slane %v829_v11, 6  ;;  %v602_v11 = vrot.slane %v882_v38, 4 }
 0x105   :  { %470 = vst [vmem:[#allocation1 + $0x1] ss:$4 sm:$0xff] %v1046_v27  ;;  %v612_v60 = vsel %vm907_vm9, %v610_v4, %v611_v33 }
 0x106   :  { %472 = vst [vmem:[#allocation1 + $0x2] ss:$4 sm:$0xff] %v1049_v28  ;;  %v607_v37 = vsel %vm907_vm9, %v605_v9, %v606_v44 }
 0x107   :  { %474 = vst [vmem:[#allocation1 + $0x3] ss:$4 sm:$0xff] %v1052_v29 }
 0x108   :  { %540 = vst [vmem:[#allocation1 + $0x21] ss:$4 sm:$0xff] %v354_v47 }
 0x109   :  { %542 = vst [vmem:[#allocation1 + $0x22] ss:$4 sm:$0xff] %v1090_v63  ;;  %v608_v63 = vrot.slane %v606_v44, 4 }
 0x10a   :  { %544 = vst [vmem:[#allocation1 + $0x23] ss:$4 sm:$0xff] %v1100_v12 }
 0x10b   :  { %v609_v0 = vsel %vm907_vm9, %v608_v63, %v917_v61  ;;  %v604_v61 = vsel %vm907_vm9, %v602_v11, %v603_v1 }
 0x10e   :  { %v483_v25 = vld.sshfl [vmem:[#allocation1] sm:$0xff pattern:$0x73625140] }
 0x10f   :  { %488 = vst [vmem:[#allocation1 + $0x3] ss:$4 sm:$0xff] %v1132_v41  ;;  %706 = vmatmul.msk.f32.vlgmr.msrb.gmra.mxu3 %vm435_vm11, %v483_v25 }
 0x110   :  { %485 = vst [vmem:[#allocation1] ss:$4 sm:$0xff] %v1100_v12 }
 0x111   :  { %486 = vst [vmem:[#allocation1 + $0x1] ss:$4 sm:$0xff] %v1103_v13  ;;  %v546_v47 = vld.sshfl [vmem:[#allocation1 + $0x20] sm:$0xff pattern:$0x73625140] }
 0x112   :  { %487 = vst [vmem:[#allocation1 + $0x2] ss:$4 sm:$0xff] %v1106_v14 }
 0x113   :  { %623 = vst [vmem:[#allocation1 + $0x21] ss:$2 sm:$0xff] %v612_v60 }
 0x114   :  { %621 = vst [vmem:[#allocation1 + $0x20] ss:$2 sm:$0xff] %v609_v0 }
 0x117   :  { %707 = vmatmul.msk.f32.gmra.mxu3 %vm435_vm11, %v484_v18 }
 0x119   :  { %v489_v62 = vld.sshfl [vmem:[#allocation1] sm:$0xff pattern:$0x73625140] }
 0x11a   :  { %530 = vst [vmem:[#allocation1] ss:$4 sm:$0xff] %v1046_v27 }
 0x11b   :  { %532 = vst [vmem:[#allocation1 + $0x1] ss:$4 sm:$0xff] %v1049_v28  ;;  %v626_v28 = vld.sshfl [vmem:[#allocation1 + $0x20] sm:$0xff pattern:$0x75316420] }
 0x11c   :  { %534 = vst [vmem:[#allocation1 + $0x2] ss:$4 sm:$0xff] %v1052_v29  ;;  %631 = vrot.lane.b32.xlu1 %v626_v28, %s759_s3  ;;  %v601_v29 = vsel %vm907_vm9, %v600_v17, %v882_v38  ;;  %v732_v38 = vld [vmem:[%s1232_s4] ss:$0 sm:$0xff]  ;;  %s760_s4 = smov [#allocation2]  }
 0x11d   :  { %536 = vst [vmem:[#allocation1 + $0x3] ss:$4 sm:$0xff] %v1065_v43  ;;  %s650_s0 = sshll.u32 %s760_s4, 4  ;;  %s651_s0 = int_to_ptr.vmem [resolvable:$true] %s650_s0 }
 0x11f   :  { %708 = vmatmul.msk.f32.gmra.mxu3 %vm435_vm11, %v489_v62 }
 0x124   :  { %v545_v27 = vld.sshfl [vmem:[#allocation1] sm:$0xff pattern:$0x73625140] }
 0x125   :  { %547 = vst [vmem:[#allocation1] ss:$4 sm:$0xff] %v1103_v13  ;;  %716 = vmatmul.msk.f32.vlgmr.msrb.gmra.mxu0 %vm435_vm11, %v545_v27 }
 0x126   :  { %548 = vst [vmem:[#allocation1 + $0x1] ss:$4 sm:$0xff] %v1106_v14 }
 0x127   :  { %549 = vst [vmem:[#allocation1 + $0x2] ss:$4 sm:$0xff] %v1132_v41 }
 0x128   :  { %550 = vst [vmem:[#allocation1 + $0x3] ss:$4 sm:$0xff] %v359_v45 }
 0x129   :  { %617 = vst [vmem:[#allocation1 + $0x10] ss:$2 sm:$0xff] %v604_v61 }
 0x12a   :  { %619 = vst [vmem:[#allocation1 + $0x11] ss:$2 sm:$0xff] %v607_v37 }
 0x12d   :  { %717 = vmatmul.msk.f32.gmra.mxu0 %vm435_vm11, %v546_v47 }
 0x12f   :  { %v551_v43 = vld.sshfl [vmem:[#allocation1] sm:$0xff pattern:$0x73625140] }
 0x130   :  { %613 = vst [vmem:[#allocation1] ss:$2 sm:$0xff] %v930_v2 }
 0x131   :  { %615 = vst [vmem:[#allocation1 + $0x1] ss:$2 sm:$0xff] %v601_v29  ;;  %v625_v13 = vld.sshfl [vmem:[#allocation1 + $0x10] sm:$0xff pattern:$0x75316420] }
 0x135   :  { %718 = vmatmul.msk.f32.gmra.mxu0 %vm435_vm11, %v551_v43 }
 0x138   :  { %v624_v12 = vld.sshfl [vmem:[#allocation1] sm:$0xff pattern:$0x75316420] }
 0x139   :  { %627 = vrot.lane.b32.xlu0 %v624_v12, %s759_s3 }
 0x141   :  { %629 = vrot.lane.b32.xlu0 %v625_v13, %s759_s3 }
 0x171   :  { %v459_v14 = vpop.f32.mrf.mxu3 }
 0x17b   :  { %v462_v7 = vpop.f32.mrf.mxu3 }
 0x187   :  { %v465_v59 = vpop.f32.mrf.mxu3 }
 0x18e   :  { %v632_v36 = vpop.permute.xlu1 %631 }
 0x192   :  { %v513_v16 = vpop.f32.mrf.mxu3 }
 0x193   :  { %v514_v19 = vadd.f32 %v513_v16, %v459_v14 }
 0x19a   :  { %v516_v22 = vpop.f32.mrf.mxu3 }
 0x19b   :  { %v517_v2 = vadd.f32 %v516_v22, %v462_v7 }
 0x1a2   :  { %v575_v20 = vpop.f32.mrf.mxu0  ;;  %v519_v58 = vpop.f32.mrf.mxu3 }
 0x1a3   :  { %v584_v23 = vadd.f32 %v575_v20, %v514_v19  ;;  %v520_v35 = vadd.f32 %v519_v58, %v465_v59 }
 0x1a5   :  { %v591_v57 = vadd.f32 %v732_v38, %v584_v23 }
 0x1aa   :  { %v578_v24 = vpop.f32.mrf.mxu0 }
 0x1ab   :  { %v628_v26 = vpop.permute.xlu0 %627  ;;  %v585_v31 = vadd.f32 %v578_v24, %v517_v2 }
 0x1ac   :  { %v636_v30 = vadd.f32 %v628_v26, %v591_v57 }
 0x1ad   :  { %v592_v34 = vadd.f32 %v732_v38, %v585_v31 }
 0x1ae   :  { %v639_v32 = vmax.f32 %v636_v30, 0.0 }
 0x1b0   :  { %643 = vst.msk [vmem:[#allocation2] sm:$0xff] %vm642_vm12, %v639_v32 }
 0x1b2   :  { %v581_v39 = vpop.f32.mrf.mxu0 }
 0x1b3   :  { %v630_v6 = vpop.permute.xlu0 %629  ;;  %v586_v8 = vadd.f32 %v581_v39, %v520_v35 }
 0x1b4   :  { %v637_v40 = vadd.f32 %v630_v6, %v592_v34 }
 0x1b5   :  { %v593_v10 = vadd.f32 %v732_v38, %v586_v8 }
 0x1b6   :  { %v640_v41 = vmax.f32 %v637_v40, 0.0 }
 0x1b7   :  { %v638_v42 = vadd.f32 %v632_v36, %v593_v10 }
 0x1b8   :  { %644 = vst.msk [vmem:[#allocation2 + $0x8] sm:$0xff] %vm642_vm12, %v640_v41 }
 0x1b9   :  { %v641_v15 = vmax.f32 %v638_v42, 0.0 }
 0x1bb   :  { %645 = vst.msk [vmem:[#allocation2 + $0x10] sm:$0xff] %vm642_vm12, %v641_v15 }
 0x1bc   :  { %658 = dma.vmem_to_hbm [thread:$0]  %s651_s0, 384, %s653_s15, [#allocation3], %s761_s16, %s761_s16, %s762_s17  }
 0x1bd   :  { %757 = dma.done.wait [#allocation3], 384  }
 0x1be   :  { %758 = vsyncadd [#allocation3], 4294966912 }
 0x1bf   :  { %663 = vsyncpa [#allocation3], 1 }

</bundles_post_ra>
